<compile_context>
chip_gen: v7x
topology: tpu7x:2x2x1
jax: 0.10.0
libtpu: 0.0.40
codegen_flags: <defaults>
</compile_context>

<pallas_src>
import jax
import jax.numpy as jnp
from jax.experimental import pallas as pl
from jax.experimental.pallas import tpu as pltpu


def _concat_broadcast_kernel(nv_ref, x_ref, o_ref):
    """One batch tile: o[:, :pp] = broadcast(new_stu_vec); o[:, pp:] = x."""
    tm = o_ref.shape[0]
    pp = nv_ref.shape[1]
    # Two dense slice stores (no concat temporary).  When pp_dim is a multiple
    # of 128 both halves are lane-aligned, unmasked vector stores.
    o_ref[:, :pp] = jnp.broadcast_to(nv_ref[...], (tm, pp))
    o_ref[:, pp:] = x_ref[...]


def _pick_batch_tile(batch, d_x, out_dim, itemsize):
    """Largest batch tile whose double-buffered blocks stay inside VMEM budget."""
    budget = 12 * 1024 * 1024                   # well under default scoped VMEM (v5e-v7x)
    per_row = 2 * (d_x + out_dim) * itemsize    # x-in + out, 2 pipeline buffers each
    tm = min(2048, max(8, budget // max(per_row, 1)))
    tm = (tm // 8) * 8
    if batch <= tm:                             # tiny problem: single full-array block
        return batch
    return tm


def target_transform_stu_forward(params, x, *, tm=None):
    """Pallas forward of Target_Transform_stu."""
    sv = params["s_stu_vectors"]                            # (S, pp_dim)
    S, pp_dim = sv.shape
    B, d_x = x.shape
    out_dim = pp_dim + d_x
    out_dtype = jnp.promote_types(x.dtype, sv.dtype)

    # Conv1d(C_in=S, C_out=1, kernel_size=1) over (S, pp_dim) is a parameter-only
    # (1, S) @ (S, pp_dim) + b.  It does not depend on x, so compute it once here
    # and feed the tiny (1, pp_dim) result to the kernel as a VMEM-resident input.
    w = params["conv_w"].reshape(1, S).astype(jnp.float32)
    b = params["conv_b"].reshape(1, 1).astype(jnp.float32)
    new_vec = (w @ sv.astype(jnp.float32) + b).astype(out_dtype)   # (1, pp_dim)
    x = x.astype(out_dtype)

    if tm is None:
        tm = _pick_batch_tile(B, d_x, out_dim, jnp.dtype(out_dtype).itemsize)
    if tm >= B:
        tm = B                                  # single block; block == full array dims
    else:
        tm = max(8, (tm // 8) * 8)              # multi-block: keep sublane-aligned

    grid = (pl.cdiv(B, tm),)                    # ragged last block handled by Pallas

    return pl.pallas_call(
        _concat_broadcast_kernel,
        out_shape=jax.ShapeDtypeStruct((B, out_dim), out_dtype),
        grid=grid,
        in_specs=[
            pl.BlockSpec((1, pp_dim), lambda i: (0, 0)),    # new_stu_vec: resident
            pl.BlockSpec((tm, d_x), lambda i: (i, 0)),      # x: batch-tiled
        ],
        out_specs=pl.BlockSpec((tm, out_dim), lambda i: (i, 0)),
        compiler_params=pltpu.CompilerParams(
            dimension_semantics=("parallel",)),             # megacore split on v7x
    )(new_vec, x)


def reference_forward(params, x):
    """Pure-JAX reference mirroring the PyTorch module."""
    sv = params["s_stu_vectors"]
    w = params["conv_w"].reshape(1, -1)
    b = params["conv_b"].reshape(1, 1)
    new_vec = w @ sv + b                                    # (1, pp_dim)
    return jnp.concatenate(
        [jnp.broadcast_to(new_vec, (x.shape[0], sv.shape[1])), x], axis=1)


def init_case(key, batch, pp_dim, n_ranges, d_x):
    """Deterministic init matching torch defaults (torch.rand vectors, Conv1d uniform)."""
    k0, k1, k2, k3 = jax.random.split(key, 4)
    bound = (1.0 / n_ranges) ** 0.5   # Conv1d: k = 1 / (C_in * kernel_size)
    params = {
        "s_stu_vectors": jax.random.uniform(k0, (n_ranges, pp_dim), jnp.float32),
        "conv_w": jax.random.uniform(k1, (1, n_ranges, 1), jnp.float32, -bound, bound),
        "conv_b": jax.random.uniform(k2, (1,), jnp.float32, -bound, bound),
    }
    x = jax.random.normal(k3, (batch, d_x), dtype=jnp.float32)
    return params, x


if __name__ == "__main__":
    key = jax.random.PRNGKey(0)
    k1, k2 = jax.random.split(key)

    # Tiny case: collapses to a single full-array block (grid of 1).
    params_a, x_a = init_case(k1, batch=16, pp_dim=128, n_ranges=3, d_x=128)
    out_a = jax.block_until_ready(target_transform_stu_forward(params_a, x_a))
    assert out_a.shape == (16, 256)
    assert bool(jnp.all(jnp.isfinite(out_a)))
    assert bool(jnp.allclose(out_a, reference_forward(params_a, x_a), atol=1e-5, rtol=1e-5))

    # Multi-step case with a ragged last block (exercises edge-block masking).
    params_b, x_b = init_case(k2, batch=1000, pp_dim=128, n_ranges=4, d_x=128)
    out_b = jax.block_until_ready(target_transform_stu_forward(params_b, x_b, tm=256))
    assert out_b.shape == (1000, 256)
    assert bool(jnp.allclose(out_b, reference_forward(params_b, x_b), atol=1e-5, rtol=1e-5))

    print("KERNEL_OK")
</pallas_src>

<mosaic_0001>
module attributes {stable_mosaic.version = 11 : i64} {
  func.func @_concat_broadcast_kernel(%arg0: i32, %arg1: memref<1x128xf32, #tpu.memory_space<vmem>>, %arg2: memref<16x128xf32, #tpu.memory_space<vmem>>, %arg3: memref<16x256xf32, #tpu.memory_space<vmem>>) attributes {dimension_semantics = [#tpu.dimension_semantics<parallel>], iteration_bounds = array<i64: 1>, scalar_prefetch = 0 : i64, scratch_operands = 0 : i64, tpu.core_type = #tpu.core_type<tc>, window_params = [{pipeline_mode = #tpu.pipeline_mode<synchronous>, transform_indices = @transform_0, window_bounds = array<i64: 1, 128>}, {transform_indices = @transform_1, window_bounds = array<i64: 16, 128>}, {transform_indices = @transform_2, window_bounds = array<i64: 16, 256>}]} {
    %c0 = arith.constant 0 : index
    %c0_0 = arith.constant 0 : index
    %0 = vector.load %arg1[%c0, %c0_0] : memref<1x128xf32, #tpu.memory_space<vmem>>, vector<1x128xf32>
    %1 = vector.shape_cast %0 : vector<1x128xf32> to vector<1x128xf32>
    %2 = vector.broadcast %1 : vector<1x128xf32> to vector<16x128xf32>
    %c0_1 = arith.constant 0 : index
    %c0_2 = arith.constant 0 : index
    %3 = vector.load %arg3[%c0_1, %c0_2] : memref<16x256xf32, #tpu.memory_space<vmem>>, vector<16x128xf32>
    tpu.vector_store %arg3[%c0_1, %c0_2], %2 {strides = array<i32>} : memref<16x256xf32, #tpu.memory_space<vmem>>, vector<16x128xf32>,
    %c0_3 = arith.constant 0 : index
    %c0_4 = arith.constant 0 : index
    %4 = vector.load %arg2[%c0_3, %c0_4] : memref<16x128xf32, #tpu.memory_space<vmem>>, vector<16x128xf32>
    %c0_5 = arith.constant 0 : index
    %c128 = arith.constant 128 : index
    %5 = vector.load %arg3[%c0_5, %c128] : memref<16x256xf32, #tpu.memory_space<vmem>>, vector<16x128xf32>
    tpu.vector_store %arg3[%c0_5, %c128], %4 {strides = array<i32>} : memref<16x256xf32, #tpu.memory_space<vmem>>, vector<16x128xf32>,
    return
  }
  func.func @transform_0(%arg0: i32) -> (i32, i32) {
    %c0_i32 = arith.constant 0 : i32
    %c0_i32_0 = arith.constant 0 : i32
    %c0_i32_1 = arith.constant 0 : i32
    return %c0_i32, %c0_i32_0 : i32, i32
  }
  func.func @transform_1(%arg0: i32) -> (i32, i32) {
    %c0_i32 = arith.constant 0 : i32
    %c0_i32_0 = arith.constant 0 : i32
    return %arg0, %c0_i32 : i32, i32
  }
  func.func @transform_2(%arg0: i32) -> (i32, i32) {
    %c0_i32 = arith.constant 0 : i32
    %c0_i32_0 = arith.constant 0 : i32
    return %arg0, %c0_i32 : i32, i32
  }
}

</mosaic_0001>

<bundles_post_ra>
// kernel: tpu_custom_call.1
= control target key start
LH: loop header
LB: loop body
LE: loop exit
PB: predicated region body
PF: predicated region fallthrough
CT: control target
= control target key end

     0   :  { %7 = vsyncpa [#allocation3], 0  ;;  %s214_s0 = inlined_call_operand.hbm [shape: f32[1,128], index: 0, kind: input, shape index: {}]   ;;  %s215_s1 = inlined_call_operand.hbm [shape: f32[16,128], index: 1, kind: input, shape index: {}]   ;;  %s216_s2 = inlined_call_operand.hbm [shape: f32[16,256], index: 2, kind: output, shape index: {}]  }
   0x1   :  { %8 = vsyncpa [#allocation6], 0 }
   0x2   :  { %9 = vsyncpa [#allocation4], 0  ;;  %s149_s9 = smov [#allocation2]   ;;  %s150_s11 = smov [#allocation5]  }
   0x3   :  { %s16_s10 = sshll.u32 %s149_s9, 4  ;;  %s25_s12 = sshll.u32 %s150_s11, 4  ;;  %s17_s10 = int_to_ptr.vmem [resolvable:$true] %s16_s10  ;;  %s171_s12 = int_to_ptr.vmem [resolvable:$true] %s25_s12 }
   0x4   :  { %s77_s15 = scalar_lea.hbm %s214_s0, 16 }
   0x5   :  { %p78_p0 = scmp.ne.s32.totalorder %s214_s0, %s77_s15  ;;  %p81_p1 = scmp.lt.u32.totalorder %s77_s15, %s214_s0 }
   0x7   :  { %p83_p2 = pnand %p81_p1, %p78_p0 }
   0x9   :  { %86 = shalt.err (!%p83_p2)
}
   0xa   :  { %s87_s20 = scalar_lea.vmem %s17_s10, 16  ;;  %s91_s21 = scalar_lea.vmem %s17_s10, 32 }
   0xb   :  { %p88_p3 = scmp.ne.s32.totalorder %s17_s10, %s87_s20  ;;  %p92_p4 = scmp.lt.s32.totalorder %s17_s10, %s17_s10 }
   0xc   :  { %p93_p5 = scmp.lt.s32.totalorder %s91_s21, %s87_s20 }
   0xe   :  { %p94_p6 = por %p93_p5, %p92_p4 }
  0x10   :  { %p95_p7 = pnand %p94_p6, %p88_p3 }
  0x12   :  { %98 = shalt.err (!%p95_p7)
}
  0x13   :  { %19 = dma.hbm_to_vmem [thread:$0]  %s214_s0, 16, %s17_s10, [#allocation3]  }
  0x14   :  { %s99_s26 = scalar_lea.hbm %s215_s1, 256 }
  0x15   :  { %p100_p8 = scmp.ne.s32.totalorder %s215_s1, %s99_s26  ;;  %p103_p9 = scmp.lt.u32.totalorder %s99_s26, %s215_s1 }
  0x17   :  { %p105_p10 = pnand %p103_p9, %p100_p8 }
  0x19   :  { %108 = shalt.err (!%p105_p10)
}
  0x1a   :  { %s109_s3 = scalar_lea.vmem %s171_s12, 256  ;;  %p114_p12 = scmp.lt.s32.totalorder %s171_s12, %s171_s12 }
  0x1b   :  { %p110_p11 = scmp.ne.s32.totalorder %s171_s12, %s109_s3  ;;  %p115_p13 = scmp.lt.s32.totalorder %s109_s3, %s109_s3 }
  0x1d   :  { %p116_p0 = por %p115_p13, %p114_p12 }
  0x1f   :  { %p117_p1 = pnand %p116_p0, %p110_p11 }
  0x21   :  { %120 = shalt.err (!%p117_p1)
}
  0x22   :  { %s151_s0 = smov 128   ;;  %s152_s4 = smov 8  }
  0x23   :  { %31 = dma.hbm_to_vmem [thread:$0]  %s215_s1, 256, %s171_s12, [#allocation6], %s151_s0, %s151_s0, %s152_s4  }
  0x24   :  { %143 = dma.done.wait [#allocation3], 16  }
  0x25   :  { %144 = vsyncadd [#allocation3], 4294967280 }
  0x26   :  { %145 = dma.done.wait [#allocation6], 256  }
  0x27   :  { %146 = vsyncadd [#allocation6], 4294967040  ;;  %s153_s7 = smov [#allocation7]   ;;  %v69_v0 = vld [vmem:[#allocation2] ss:$0 sm:$0xff]  ;;  %v47_v1 = vld [vmem:[#allocation5] sm:$0xff] }
  0x28   :  { %s56_s8 = sshll.u32 %s153_s7, 4  ;;  %v48_v2 = vld [vmem:[#allocation5 + $0x8] sm:$0xff]  ;;  %45 = vst [vmem:[#allocation7] sm:$0xff] %v69_v0  ;;  %46 = vst [vmem:[#allocation7 + $0x10] sm:$0xff] %v69_v0  ;;  %s57_s8 = int_to_ptr.vmem [resolvable:$true] %s56_s8 }
  0x29   :  { %49 = vst [vmem:[#allocation7 + $0x8] sm:$0xff] %v47_v1  ;;  %50 = vst [vmem:[#allocation7 + $0x18] sm:$0xff] %v48_v2  ;;  %s121_s9 = scalar_lea.vmem %s57_s8, 512  ;;  %p126_p3 = scmp.lt.s32.totalorder %s57_s8, %s57_s8 }
  0x2a   :  { %p122_p2 = scmp.ne.s32.totalorder %s57_s8, %s121_s9  ;;  %p127_p4 = scmp.lt.s32.totalorder %s121_s9, %s121_s9 }
  0x2c   :  { %p128_p5 = por %p127_p4, %p126_p3 }
  0x2e   :  { %p129_p6 = pnand %p128_p5, %p122_p2 }
  0x30   :  { %132 = shalt.err (!%p129_p6)
}
  0x31   :  { %s133_s11 = scalar_lea.hbm %s216_s2, 512 }
  0x32   :  { %p134_p7 = scmp.ne.s32.totalorder %s216_s2, %s133_s11  ;;  %p137_p8 = scmp.lt.u32.totalorder %s133_s11, %s216_s2 }
  0x34   :  { %p139_p9 = pnand %p137_p8, %p134_p7 }
  0x36   :  { %142 = shalt.err (!%p139_p9)
}
  0x37   :  { %s154_s16 = smov 256   ;;  %s155_s17 = smov 16  }
  0x38   :  { %62 = dma.vmem_to_hbm [thread:$0]  %s57_s8, 512, %s216_s2, [#allocation4], %s154_s16, %s154_s16, %s155_s17  }
  0x39   :  { %147 = dma.done.wait [#allocation4], 512  }
  0x3a   :  { %148 = vsyncadd [#allocation4], 4294966784 }
  0x3b   :  { %66 = vsyncpa [#allocation3], 1 }
  0x3c   :  { %67 = vsyncpa [#allocation6], 1 }
  0x3d   :  { %68 = vsyncpa [#allocation4], 1 }

</bundles_post_ra>
